<compile_context>
chip_gen: v7x
topology: tpu7x:2x2x1
jax: 0.10.0
libtpu: 0.0.40
codegen_flags: <defaults>
</compile_context>

<pallas_src>
import functools

import jax
import jax.numpy as jnp
from jax.experimental import pallas as pl
from jax.experimental.pallas import tpu as pltpu

_VMEM_LIMIT = 48 * 1024 * 1024  # stays under v7x's 64 MiB physical VMEM; fine on v5e/v6e


def _fit(dim, target):
    """Divisor ladder: largest tile <= target (halving) that divides dim; full dim otherwise."""
    t = min(target, dim)
    while t >= 8 and dim % t != 0:
        t //= 2
    return t if (t >= 8 and dim % t == 0) else dim


# --------------------------- tiled dense matmul ------------------------------

def _matmul_kernel(x_ref, w_ref, o_ref, acc_ref):
    @pl.when(pl.program_id(2) == 0)
    def _():
        acc_ref[...] = jnp.zeros_like(acc_ref)

    acc_ref[...] += jnp.dot(x_ref[...], w_ref[...],
                            preferred_element_type=jnp.float32)

    @pl.when(pl.program_id(2) == pl.num_programs(2) - 1)
    def _():
        o_ref[...] = acc_ref[...].astype(o_ref.dtype)


def matmul(x, w, out_dtype=jnp.bfloat16, tm=512, tn=256, tk=1024):
    m, k = x.shape
    k2, n = w.shape
    assert k == k2
    tm, tn, tk = _fit(m, tm), _fit(n, tn), _fit(k, tk)
    return pl.pallas_call(
        _matmul_kernel,
        out_shape=jax.ShapeDtypeStruct((m, n), out_dtype),
        grid=(m // tm, n // tn, k // tk),
        in_specs=[pl.BlockSpec((tm, tk), lambda i, j, l: (i, l)),
                  pl.BlockSpec((tk, tn), lambda i, j, l: (l, j))],
        out_specs=pl.BlockSpec((tm, tn), lambda i, j, l: (i, j)),
        scratch_shapes=[pltpu.VMEM((tm, tn), jnp.float32)],
        compiler_params=pltpu.CompilerParams(
            dimension_semantics=("parallel", "parallel", "arbitrary"),
            vmem_limit_bytes=_VMEM_LIMIT),
        cost_estimate=pl.CostEstimate(
            flops=2 * m * n * k, transcendentals=0,
            bytes_accessed=2 * (m * k + k * n + m * n)),
    )(x, w)


# ------------------------------- RMSNorm -------------------------------------

def _rmsnorm_kernel(x_ref, w_ref, o_ref, *, eps):
    x = x_ref[...].astype(jnp.float32)
    var = jnp.mean(x * x, axis=-1, keepdims=True)
    o_ref[...] = (x * jax.lax.rsqrt(var + eps) * w_ref[...]).astype(o_ref.dtype)


def rmsnorm(x, w, eps, tt=512):
    t, d = x.shape
    tt = _fit(t, tt)
    return pl.pallas_call(
        functools.partial(_rmsnorm_kernel, eps=eps),
        out_shape=jax.ShapeDtypeStruct((t, d), x.dtype),
        grid=(t // tt,),
        in_specs=[pl.BlockSpec((tt, d), lambda i: (i, 0)),
                  pl.BlockSpec((1, d), lambda i: (0, 0))],
        out_specs=pl.BlockSpec((tt, d), lambda i: (i, 0)),
        compiler_params=pltpu.CompilerParams(
            dimension_semantics=("parallel",),
            vmem_limit_bytes=_VMEM_LIMIT),
    )(x, w)


def _add_rmsnorm_kernel(x_ref, r_ref, w_ref, o_ref, nr_ref, *, eps):
    s = x_ref[...].astype(jnp.float32) + r_ref[...].astype(jnp.float32)
    nr_ref[...] = s.astype(nr_ref.dtype)
    var = jnp.mean(s * s, axis=-1, keepdims=True)
    o_ref[...] = (s * jax.lax.rsqrt(var + eps) * w_ref[...]).astype(o_ref.dtype)


def add_rmsnorm(x, res, w, eps, tt=512):
    t, d = x.shape
    tt = _fit(t, tt)
    return pl.pallas_call(
        functools.partial(_add_rmsnorm_kernel, eps=eps),
        out_shape=(jax.ShapeDtypeStruct((t, d), x.dtype),
                   jax.ShapeDtypeStruct((t, d), x.dtype)),
        grid=(t // tt,),
        in_specs=[pl.BlockSpec((tt, d), lambda i: (i, 0)),
                  pl.BlockSpec((tt, d), lambda i: (i, 0)),
                  pl.BlockSpec((1, d), lambda i: (0, 0))],
        out_specs=(pl.BlockSpec((tt, d), lambda i: (i, 0)),
                   pl.BlockSpec((tt, d), lambda i: (i, 0))),
        compiler_params=pltpu.CompilerParams(
            dimension_semantics=("parallel",),
            vmem_limit_bytes=_VMEM_LIMIT),
    )(x, res, w)


# ---------------- fused per-head q/k RMSNorm + RoPE + scale + head split -----

def _qk_norm_rope_kernel(qkv_ref, qw_ref, kw_ref, cos_ref, sin_ref,
                         q_ref, k_ref, v_ref, *, eps, nh, nkv, hd, scale):
    half = hd // 2
    q_size = nh * hd
    kv_size = nkv * hd
    cos = cos_ref[...].astype(jnp.float32)
    sin = sin_ref[...].astype(jnp.float32)
    qw = qw_ref[...].astype(jnp.float32)
    kw = kw_ref[...].astype(jnp.float32)

    def headnorm(xh, w):
        var = jnp.mean(xh * xh, axis=-1, keepdims=True)
        return xh * jax.lax.rsqrt(var + eps) * w

    def rope(xh):  # NeoX rotate-half
        x1 = xh[:, :half]
        x2 = xh[:, half:]
        return jnp.concatenate([x1 * cos - x2 * sin, x2 * cos + x1 * sin], axis=-1)

    # Per-head upcast (no full fp32 copy of the whole qkv tile).
    for h in range(nh):
        qh = qkv_ref[:, h * hd:(h + 1) * hd].astype(jnp.float32)
        q_ref[h] = (rope(headnorm(qh, qw)) * scale).astype(q_ref.dtype)  # scale folded here
    for h in range(nkv):
        kh = qkv_ref[:, q_size + h * hd:q_size + (h + 1) * hd].astype(jnp.float32)
        k_ref[h] = rope(headnorm(kh, kw)).astype(k_ref.dtype)
        off = q_size + kv_size + h * hd
        v_ref[h] = qkv_ref[:, off:off + hd]          # direct bf16 copy, no upcast


def qk_norm_rope_split(qkv, q_w, k_w, cos, sin, *, nh, nkv, hd, eps, scale, tt=512):
    t, qkv_dim = qkv.shape
    tt = _fit(t, tt)
    half = hd // 2
    kernel = functools.partial(_qk_norm_rope_kernel, eps=eps, nh=nh, nkv=nkv,
                               hd=hd, scale=scale)
    return pl.pallas_call(
        kernel,
        out_shape=(jax.ShapeDtypeStruct((nh, t, hd), jnp.bfloat16),
                   jax.ShapeDtypeStruct((nkv, t, hd), jnp.bfloat16),
                   jax.ShapeDtypeStruct((nkv, t, hd), jnp.bfloat16)),
        grid=(t // tt,),
        in_specs=[pl.BlockSpec((tt, qkv_dim), lambda i: (i, 0)),
                  pl.BlockSpec((1, hd), lambda i: (0, 0)),
                  pl.BlockSpec((1, hd), lambda i: (0, 0)),
                  pl.BlockSpec((tt, half), lambda i: (i, 0)),
                  pl.BlockSpec((tt, half), lambda i: (i, 0))],
        out_specs=(pl.BlockSpec((nh, tt, hd), lambda i: (0, i, 0)),
                   pl.BlockSpec((nkv, tt, hd), lambda i: (0, i, 0)),
                   pl.BlockSpec((nkv, tt, hd), lambda i: (0, i, 0))),
        compiler_params=pltpu.CompilerParams(
            dimension_semantics=("parallel",),
            vmem_limit_bytes=_VMEM_LIMIT),
    )(qkv, q_w, k_w, cos, sin)


# ---------------------- flash-style causal GQA attention ---------------------
# Grid: (kv_head, q_tile, kv_tile). K/V fetched once per kv head and shared across the
# whole query group; KV blocks above the causal diagonal clamp their index_map to the
# resident block (DMA elided) and skip all compute; causal mask only on diagonal blocks.

def _flash_attn_kernel(q_ref, k_ref, v_ref, o_ref, m_ref, l_ref, acc_ref,
                       *, tq, tk, group):
    qi = pl.program_id(1)
    ki = pl.program_id(2)

    @pl.when(ki == 0)
    def _():
        m_ref[...] = jnp.full_like(m_ref, -1e30)
        l_ref[...] = jnp.zeros_like(l_ref)
        acc_ref[...] = jnp.zeros_like(acc_ref)

    def process(masked):
        k = k_ref[0]                      # (tk, hd) bf16, shared by the whole group
        v = v_ref[0]
        if masked:
            row = qi * tq + jax.lax.broadcasted_iota(jnp.int32, (tq, tk), 0)
            col = ki * tk + jax.lax.broadcasted_iota(jnp.int32, (tq, tk), 1)
            keep = row >= col
        for g in range(group):            # GQA group of query heads sharing this K/V
            q = q_ref[g]                  # (tq, hd) bf16, pre-scaled
            s = jax.lax.dot_general(q, k, (((1,), (1,)), ((), ())),
                                    preferred_element_type=jnp.float32)
            if masked:
                s = jnp.where(keep, s, -1e30)
            m_prev = m_ref[g]
            m_new = jnp.maximum(m_prev, jnp.max(s, axis=-1, keepdims=True))
            alpha = jnp.exp(m_prev - m_new)
            p = jnp.exp(s - m_new)
            l_ref[g] = alpha * l_ref[g] + jnp.sum(p, axis=-1, keepdims=True)
            acc_ref[g] = alpha * acc_ref[g] + jnp.dot(
                p.astype(v.dtype), v, preferred_element_type=jnp.float32)
            m_ref[g] = m_new

    @pl.when(ki < qi)       # interior blocks: no masking work
    def _():
        process(False)

    @pl.when(ki == qi)      # diagonal block: causal mask
    def _():
        process(True)

    @pl.when(ki == pl.num_programs(2) - 1)
    def _():
        for g in range(group):
            o_ref[g] = (acc_ref[g] *
                        pl.reciprocal(l_ref[g], approx=True)).astype(o_ref.dtype)


def flash_attention(q, k, v, *, tile=512):
    nh, t, hd = q.shape
    nkv = k.shape[0]
    group = nh // nkv
    tq = tk = _fit(t, tile)
    kernel = functools.partial(_flash_attn_kernel, tq=tq, tk=tk, group=group)
    return pl.pallas_call(
        kernel,
        out_shape=jax.ShapeDtypeStruct((nh, t, hd), jnp.bfloat16),
        grid=(nkv, t // tq, t // tk),
        in_specs=[
            pl.BlockSpec((group, tq, hd), lambda h, qi, ki: (h, qi, 0)),
            # clamp to the resident block above the diagonal -> DMA elided
            pl.BlockSpec((1, tk, hd), lambda h, qi, ki: (h, jnp.minimum(ki, qi), 0)),
            pl.BlockSpec((1, tk, hd), lambda h, qi, ki: (h, jnp.minimum(ki, qi), 0)),
        ],
        out_specs=pl.BlockSpec((group, tq, hd), lambda h, qi, ki: (h, qi, 0)),
        scratch_shapes=[pltpu.VMEM((group, tq, 1), jnp.float32),
                        pltpu.VMEM((group, tq, 1), jnp.float32),
                        pltpu.VMEM((group, tq, hd), jnp.float32)],
        compiler_params=pltpu.CompilerParams(
            dimension_semantics=("parallel", "parallel", "arbitrary"),
            vmem_limit_bytes=_VMEM_LIMIT),
    )(q, k, v)


# ------------- o_proj: contract (head, hd) directly, Hb heads per step --------

def _attn_oproj_kernel(a_ref, w_ref, o_ref, acc_ref, *, hb):
    @pl.when(pl.program_id(2) == 0)
    def _():
        acc_ref[...] = jnp.zeros_like(acc_ref)

    for h in range(hb):  # unrolled dots into the same accumulator
        acc_ref[...] += jnp.dot(a_ref[h], w_ref[h],
                                preferred_element_type=jnp.float32)

    @pl.when(pl.program_id(2) == pl.num_programs(2) - 1)
    def _():
        o_ref[...] = acc_ref[...].astype(o_ref.dtype)


def attn_out_proj(attn, o_w, *, tm=512, tn=256, hb=4):
    nh, t, hd = attn.shape
    d = o_w.shape[1]
    o_w3 = o_w.reshape(nh, hd, d)           # free reshape (splits leading dim)
    tm, tn = _fit(t, tm), _fit(d, tn)
    hb = _fit(nh, hb)
    return pl.pallas_call(
        functools.partial(_attn_oproj_kernel, hb=hb),
        out_shape=jax.ShapeDtypeStruct((t, d), jnp.bfloat16),
        grid=(t // tm, d // tn, nh // hb),
        in_specs=[pl.BlockSpec((hb, tm, hd), lambda i, j, h: (h, i, 0)),
                  pl.BlockSpec((hb, hd, tn), lambda i, j, h: (h, 0, j))],
        out_specs=pl.BlockSpec((tm, tn), lambda i, j, h: (i, j)),
        scratch_shapes=[pltpu.VMEM((tm, tn), jnp.float32)],
        compiler_params=pltpu.CompilerParams(
            dimension_semantics=("parallel", "parallel", "arbitrary"),
            vmem_limit_bytes=_VMEM_LIMIT),
    )(attn, o_w3)


# ------------------------------ MoE experts -----------------------------------
# Grid (token_tile, i_chunk, expert). Fused gate+up weight (one dot per step); counts and
# a per-expert fetch index are scalar-prefetched: unrouted experts skip the MXU work and
# their weight index_map aliases the previous routed expert's block so the DMA is elided
# for runs of unrouted experts.

def _moe_kernel(counts_ref, fidx_ref, x_ref, rw_ref, wgu_ref, wd_ref, o_ref,
                acc_ref, *, ti):
    ii = pl.program_id(1)
    e = pl.program_id(2)
    n_i = pl.num_programs(1)
    n_e = pl.num_programs(2)

    @pl.when(jnp.logical_and(ii == 0, e == 0))
    def _():
        acc_ref[...] = jnp.zeros_like(acc_ref)

    @pl.when(counts_ref[e] > 0)          # skip MXU work for unrouted experts
    def _():
        x = x_ref[...]                   # (tt, D) bf16
        gu = jnp.dot(x, wgu_ref[0, 0], preferred_element_type=jnp.float32)  # (tt, 2*ti)
        gate = gu[:, :ti]
        up = gu[:, ti:]
        h = jax.nn.silu(gate) * up       # fp32 on the VPU/EUP (SiluAndMul)
        out = jnp.dot(h.astype(wd_ref.dtype), wd_ref[0, 0],
                      preferred_element_type=jnp.float32)
        acc_ref[...] += rw_ref[0] * out  # rw_ref[0] is the (tt, 1) routing column

    @pl.when(jnp.logical_and(ii == n_i - 1, e == n_e - 1))
    def _():
        o_ref[...] = acc_ref[...].astype(o_ref.dtype)


def moe_experts(x, rw_ext, counts, fidx, wgu, wd, *, tt=512):
    t, d = x.shape
    n_exp, n_i, _, two_ti = wgu.shape
    ti = two_ti // 2
    tt = _fit(t, tt)
    gs = pltpu.PrefetchScalarGridSpec(
        num_scalar_prefetch=2,
        grid=(t // tt, n_i, n_exp),
        in_specs=[
            pl.BlockSpec((tt, d), lambda n, i, e, cnt, fx: (n, 0)),
            pl.BlockSpec((1, tt, 1), lambda n, i, e, cnt, fx: (e, n, 0)),
            pl.BlockSpec((1, 1, d, two_ti), lambda n, i, e, cnt, fx: (fx[e], i, 0, 0)),
            pl.BlockSpec((1, 1, ti, d), lambda n, i, e, cnt, fx: (fx[e], i, 0, 0)),
        ],
        out_specs=pl.BlockSpec((tt, d), lambda n, i, e, cnt, fx: (n, 0)),
        scratch_shapes=[pltpu.VMEM((tt, d), jnp.float32)],
    )
    return pl.pallas_call(
        functools.partial(_moe_kernel, ti=ti),
        out_shape=jax.ShapeDtypeStruct((t, d), jnp.bfloat16),
        grid_spec=gs,
        compiler_params=pltpu.CompilerParams(
            dimension_semantics=("parallel", "arbitrary", "arbitrary"),
            vmem_limit_bytes=_VMEM_LIMIT),
    )(counts, fidx, x, rw_ext, wgu, wd)


# ------------------------------- JAX glue --------------------------------------

def rope_tables(positions, head_dim, theta):
    half = head_dim // 2
    inv_freq = 1.0 / (theta ** (jnp.arange(0, half, dtype=jnp.float32) * 2.0 / head_dim))
    freqs = positions.astype(jnp.float32)[:, None] * inv_freq[None, :]
    return jnp.cos(freqs), jnp.sin(freqs)


def route_tokens(router_logits, top_k, renormalize):
    # vLLM fused_topk semantics: softmax -> top-k -> (optional) renormalize.
    t, e = router_logits.shape
    scores = jax.nn.softmax(router_logits.astype(jnp.float32), axis=-1)
    topk_vals, topk_idx = jax.lax.top_k(scores, top_k)
    if renormalize:
        topk_vals = topk_vals / jnp.sum(topk_vals, axis=-1, keepdims=True)
    dense = jnp.zeros((t, e), jnp.float32)
    dense = dense.at[jnp.arange(t)[:, None], topk_idx].add(topk_vals)
    counts = jnp.zeros((e,), jnp.int32).at[topk_idx.reshape(-1)].add(1)
    # fetch_idx[e]: e if expert e is routed, else the most recent routed expert (DMA alias).
    idx = jnp.arange(e, dtype=jnp.int32)
    fetch = jax.lax.cummax(jnp.where(counts > 0, idx, -1), axis=0)
    fetch = jnp.maximum(fetch, 0).astype(jnp.int32)
    rw_ext = dense.T[:, :, None]                 # (E, T, 1): per-expert column via index_map
    return rw_ext, counts, fetch


def init_params(cfg, key):
    d = cfg["hidden_size"]
    hd = cfg["head_dim"]
    nh = cfg["num_heads"]
    nkv = cfg["num_kv_heads"]
    e = cfg["num_experts"]
    i = cfg["moe_intermediate_size"]
    qkv_out = nh * hd + 2 * nkv * hd
    ti = _fit(i, 512)                    # offline MoE weight chunking along I
    n_i = i // ti

    def bf16(x):
        return x.astype(jnp.bfloat16)

    keys = jax.random.split(key, 2 + cfg["num_layers"])
    params = {
        "embed": bf16(jax.random.normal(keys[0], (cfg["vocab_size"], d), jnp.float32) * 0.02),
        "final_norm": jnp.ones((1, d), jnp.float32),
        "layers": [],
    }
    for li in range(cfg["num_layers"]):
        ks = jax.random.split(keys[2 + li], 8)
        wg = jax.random.normal(ks[3], (e, d, i), jnp.float32) * 0.05
        wu = jax.random.normal(ks[4], (e, d, i), jnp.float32) * 0.05
        wd = jax.random.normal(ks[5], (e, i, d), jnp.float32) * 0.05
        # Offline fusion: gate/up concatenated per ti-chunk -> (E, n_i, d, 2*ti); wd chunked.
        wgu = jnp.concatenate(
            [wg.reshape(e, d, n_i, ti).transpose(0, 2, 1, 3),
             wu.reshape(e, d, n_i, ti).transpose(0, 2, 1, 3)], axis=-1)
        wd_r = wd.reshape(e, n_i, ti, d)
        params["layers"].append({
            "qkv_w": bf16(jax.random.normal(ks[0], (d, qkv_out), jnp.float32) * 0.05),
            "o_w": bf16(jax.random.normal(ks[1], (nh * hd, d), jnp.float32) * 0.05),
            "q_norm": jnp.ones((1, hd), jnp.float32),
            "k_norm": jnp.ones((1, hd), jnp.float32),
            "input_ln": jnp.ones((1, d), jnp.float32),
            "post_ln": jnp.ones((1, d), jnp.float32),
            "gate_w": bf16(jax.random.normal(ks[2], (d, e), jnp.float32) * 0.05),
            "wgu": bf16(wgu),
            "wd": bf16(wd_r),
        })
    return params


def qwen3_moe_forward(params, input_ids, positions, cfg):
    hd = cfg["head_dim"]
    nh = cfg["num_heads"]
    nkv = cfg["num_kv_heads"]
    eps = cfg["rms_norm_eps"]
    scale = hd ** -0.5

    cos, sin = rope_tables(positions, hd, cfg["rope_theta"])

    hidden = params["embed"][input_ids]            # (T, D) bf16, embedding gather (glue)
    residual = None

    for lp in params["layers"]:
        # --- input layernorm (fused add+norm after the first layer) ---
        if residual is None:
            residual = hidden
            hidden = rmsnorm(hidden, lp["input_ln"], eps)
        else:
            hidden, residual = add_rmsnorm(hidden, residual, lp["input_ln"], eps)

        # --- self attention ---
        qkv = matmul(hidden, lp["qkv_w"])                                   # (T, q+2kv) bf16
        q, k, v = qk_norm_rope_split(qkv, lp["q_norm"], lp["k_norm"], cos, sin,
                                     nh=nh, nkv=nkv, hd=hd, eps=eps, scale=scale)
        attn = flash_attention(q, k, v)                                     # (H, T, hd) bf16
        hidden = attn_out_proj(attn, lp["o_w"])                             # (T, D) bf16

        # --- post-attention layernorm ---
        hidden, residual = add_rmsnorm(hidden, residual, lp["post_ln"], eps)

        # --- sparse MoE block ---
        router_logits = matmul(hidden, lp["gate_w"], out_dtype=jnp.float32)  # (T, E) f32
        rw_ext, counts, fidx = route_tokens(router_logits, cfg["num_experts_per_tok"],
                                            cfg["norm_topk_prob"])
        hidden = moe_experts(hidden, rw_ext, counts, fidx, lp["wgu"], lp["wd"])

    # final norm (fused with last residual add)
    hidden, _ = add_rmsnorm(hidden, residual, params["final_norm"], eps)
    return hidden


# ------------------------------- main -------------------------------------------

if __name__ == "__main__":
    cfg = {
        "vocab_size": 128,
        "hidden_size": 64,
        "num_heads": 4,
        "num_kv_heads": 2,
        "head_dim": 32,
        "num_layers": 2,
        "num_experts": 4,
        "num_experts_per_tok": 2,
        "moe_intermediate_size": 64,
        "norm_topk_prob": True,
        "rms_norm_eps": 1e-6,
        "rope_theta": 10000.0,
    }
    seq_len = 8

    key = jax.random.PRNGKey(0)
    pkey, ikey = jax.random.split(key)
    params = init_params(cfg, pkey)

    input_ids = jax.random.randint(ikey, (seq_len,), 0, cfg["vocab_size"], dtype=jnp.int32)
    positions = jnp.arange(seq_len, dtype=jnp.int32)

    out = qwen3_moe_forward(params, input_ids, positions, cfg)
    out = jax.block_until_ready(out)

    assert out.shape == (seq_len, cfg["hidden_size"])
    assert bool(jnp.all(jnp.isfinite(out.astype(jnp.float32))))
    print("KERNEL_OK")
</pallas_src>

<mosaic_0001>
module attributes {stable_mosaic.version = 11 : i64} {
  func.func @_rmsnorm_kernel(%arg0: i32, %arg1: memref<8x64xbf16, #tpu.memory_space<vmem>>, %arg2: memref<1x64xf32, #tpu.memory_space<vmem>>, %arg3: memref<8x64xbf16, #tpu.memory_space<vmem>>) attributes {dimension_semantics = [#tpu.dimension_semantics<parallel>], iteration_bounds = array<i64: 1>, scalar_prefetch = 0 : i64, scratch_operands = 0 : i64, tpu.core_type = #tpu.core_type<tc>, window_params = [{transform_indices = @transform_0, window_bounds = array<i64: 8, 64>}, {pipeline_mode = #tpu.pipeline_mode<synchronous>, transform_indices = @transform_1, window_bounds = array<i64: 1, 64>}, {transform_indices = @transform_2, window_bounds = array<i64: 8, 64>}]} {
    %c0 = arith.constant 0 : index
    %c0_0 = arith.constant 0 : index
    %0 = vector.load %arg1[%c0, %c0_0] : memref<8x64xbf16, #tpu.memory_space<vmem>>, vector<8x64xbf16>
    %1 = arith.extf %0 : vector<8x64xbf16> to vector<8x64xf32>
    %2 = arith.mulf %1, %1 : vector<8x64xf32>
    %cst = arith.constant dense<0.000000e+00> : vector<8xf32>
    %3 = vector.multi_reduction <add>, %2, %cst [1] : vector<8x64xf32> to vector<8xf32>
    %4 = vector.shape_cast %3 : vector<8xf32> to vector<8x1xf32>
    %cst_1 = arith.constant 6.400000e+01 : f32
    %5 = vector.broadcast %cst_1 : f32 to vector<8x1xf32>
    %6 = arith.divf %4, %5 : vector<8x1xf32>
    %cst_2 = arith.constant 9.99999997E-7 : f32
    %7 = vector.broadcast %cst_2 : f32 to vector<8x1xf32>
    %8 = arith.addf %6, %7 : vector<8x1xf32>
    %9 = math.rsqrt %8 : vector<8x1xf32>
    %10 = vector.broadcast %9 : vector<8x1xf32> to vector<8x64xf32>
    %11 = arith.mulf %1, %10 : vector<8x64xf32>
    %c0_3 = arith.constant 0 : index
    %c0_4 = arith.constant 0 : index
    %12 = vector.load %arg2[%c0_3, %c0_4] : memref<1x64xf32, #tpu.memory_space<vmem>>, vector<1x64xf32>
    %13 = vector.broadcast %12 : vector<1x64xf32> to vector<8x64xf32>
    %14 = arith.mulf %11, %13 : vector<8x64xf32>
    %15 = arith.truncf %14 : vector<8x64xf32> to vector<8x64xbf16>
    %c0_5 = arith.constant 0 : index
    %c0_6 = arith.constant 0 : index
    %16 = vector.load %arg3[%c0_5, %c0_6] : memref<8x64xbf16, #tpu.memory_space<vmem>>, vector<8x64xbf16>
    tpu.vector_store %arg3[%c0_5, %c0_6], %15 {strides = array<i32>} : memref<8x64xbf16, #tpu.memory_space<vmem>>, vector<8x64xbf16>,
    return
  }
  func.func @transform_0(%arg0: i32) -> (i32, i32) {
    %c0_i32 = arith.constant 0 : i32
    %c0_i32_0 = arith.constant 0 : i32
    return %arg0, %c0_i32 : i32, i32
  }
  func.func @transform_1(%arg0: i32) -> (i32, i32) {
    %c0_i32 = arith.constant 0 : i32
    %c0_i32_0 = arith.constant 0 : i32
    %c0_i32_1 = arith.constant 0 : i32
    return %c0_i32, %c0_i32_0 : i32, i32
  }
  func.func @transform_2(%arg0: i32) -> (i32, i32) {
    %c0_i32 = arith.constant 0 : i32
    %c0_i32_0 = arith.constant 0 : i32
    return %arg0, %c0_i32 : i32, i32
  }
}

</mosaic_0001>

<bundles_post_ra>
// kernel: tpu_custom_call.1
= control target key start
LH: loop header
LB: loop body
LE: loop exit
PB: predicated region body
PF: predicated region fallthrough
CT: control target
= control target key end

     0   :  { %7 = vsyncpa [#allocation3], 0  ;;  %s159_s0 = inlined_call_operand.hbm [shape: bf16[8,64], index: 0, kind: input, shape index: {}]   ;;  %s160_s1 = inlined_call_operand.vmem [shape: f32[1,64], index: 1, kind: input, shape index: {}]   ;;  %s161_s2 = inlined_call_operand.hbm [shape: bf16[8,64], index: 2, kind: output, shape index: {}]  }
   0x1   :  { %8 = vsyncpa [#allocation4], 0  ;;  %s115_s9 = smov [#allocation2]   ;;  %s67_s13 = scalar_lea.hbm %s159_s0, 64 }
   0x2   :  { %s15_s10 = sshll.u32 %s115_s9, 4  ;;  %p68_p0 = scmp.ne.s32.totalorder %s159_s0, %s67_s13  ;;  %s16_s10 = int_to_ptr.vmem [resolvable:$true] %s15_s10 }
   0x3   :  { %p71_p1 = scmp.lt.u32.totalorder %s67_s13, %s159_s0 }
   0x5   :  { %p73_p2 = pnand %p71_p1, %p68_p0 }
   0x7   :  { %76 = shalt.err (!%p73_p2)
}
   0x8   :  { %s77_s18 = scalar_lea.vmem %s16_s10, 64  ;;  %p82_p4 = scmp.lt.s32.totalorder %s16_s10, %s16_s10 }
   0x9   :  { %p78_p3 = scmp.ne.s32.totalorder %s16_s10, %s77_s18  ;;  %p83_p5 = scmp.lt.s32.totalorder %s77_s18, %s77_s18 }
   0xb   :  { %p84_p6 = por %p83_p5, %p82_p4 }
   0xd   :  { %p85_p7 = pnand %p84_p6, %p78_p3 }
   0xf   :  { %88 = shalt.err (!%p85_p7)
}
  0x10   :  { %18 = dma.hbm_to_vmem [thread:$0]  %s159_s0, 64, %s16_s10, [#allocation3]  }
  0x11   :  { %111 = dma.done.wait [#allocation3], 64  }
  0x12   :  { %112 = vsyncadd [#allocation3], 4294967232  ;;  %v24_v0 = vld [vmem:[#allocation2] sm:$0xf]  ;;  %vm27_vm0 = vcmask 523264   ;;  %s116_s23 = smov [#allocation5]  }
  0x13   :  { %v25_v1 = vunpack.c.l.bf16 %v24_v0  ;;  %v62_v8 = vld [vmem:[%s160_s1] ss:$0 sm:$0xff]  ;;  %s53_s0 = sshll.u32 %s116_s23, 4  ;;  %vm45_vm1 = vcmask 519168   ;;  %s54_s0 = int_to_ptr.vmem [resolvable:$true] %s53_s0 }
  0x14   :  { %s89_s24 = scalar_lea.vmem %s54_s0, 64  ;;  %p94_p9 = scmp.lt.s32.totalorder %s54_s0, %s54_s0 }
  0x15   :  { %v26_v2 = vmul.f32 %v25_v1, %v25_v1  ;;  %p90_p8 = scmp.ne.s32.totalorder %s54_s0, %s89_s24  ;;  %p95_p10 = scmp.lt.s32.totalorder %s89_s24, %s89_s24 }
  0x17   :  { %v28_v3 = vsel %vm27_vm0, %v26_v2, 0.0  ;;  %p96_p11 = por %p95_p10, %p94_p9 }
  0x18   :  { %29 = vadd.xlane.f32.xlu0 %v28_v3 }
  0x19   :  { %p97_p12 = pnand %p96_p11, %p90_p8 }
  0xa5   :  { %v30_v4 = vpop.xlane.xlu0 %29 }
  0xa6   :  { %v32_v5 = vmul.f32 0.015625, %v30_v4 }
  0xa8   :  { %v33_v6 = vadd.f32 1e-06, %v32_v5 }
  0xaa   :  { %65 = vrsqrt.f32 %v33_v6 }
  0xb4   :  { %v66_v7 = vpop.eup %65 }
  0xb5   :  { %v35_v9 = vmul.f32 %v66_v7, %v25_v1 }
  0xb7   :  { %v43_v10 = vmul.f32 %v62_v8, %v35_v9 }
  0xb9   :  { %v44_v11 = vpack.c.bf16 %v43_v10, %v43_v10 }
  0xbb   :  { %46 = vst.msk [vmem:[#allocation5] sm:$0xf] %vm45_vm1, %v44_v11 }
  0xbc   :  { %100 = shalt.err (!%p97_p12)
}
  0xbd   :  { %s101_s27 = scalar_lea.hbm %s161_s2, 64 }
  0xbe   :  { %p102_p13 = scmp.ne.s32.totalorder %s161_s2, %s101_s27  ;;  %p105_p0 = scmp.lt.u32.totalorder %s101_s27, %s161_s2 }
  0xc0   :  { %p107_p1 = pnand %p105_p0, %p102_p13 }
  0xc2   :  { %110 = shalt.err (!%p107_p1)
}
  0xc3   :  { %56 = dma.vmem_to_hbm [thread:$0]  %s54_s0, 64, %s161_s2, [#allocation4]  }
  0xc4   :  { %113 = dma.done.wait [#allocation4], 64  }
  0xc5   :  { %114 = vsyncadd [#allocation4], 4294967232 }
  0xc6   :  { %60 = vsyncpa [#allocation3], 1 }
  0xc7   :  { %61 = vsyncpa [#allocation4], 1 }

</bundles_post_ra>
